<compile_context>
chip_gen: v6e
topology: v6e:2x2x1
jax: 0.10.0
libtpu: 0.0.40
codegen_flags: <defaults>
</compile_context>

<pallas_src>
import jax
import jax.numpy as jnp
from jax.experimental import pallas as pl
from jax.experimental.pallas import tpu as pltpu


def _round_up(x, m):
    return (x + m - 1) // m * m


def _cdiv(a, b):
    return -(-a // b)


def _pick_packing(hidden):
    """(H_pack, G): each 128-lane group packs G positions of H_pack lanes.

    G is capped at 8 (H_pack >= 16) so tile rows (ts // G) stay multiples of 16
    and every in-kernel reshape is a pure leading-dim merge/split (layout
    preserving for both f32 and bf16 sublane tiling)."""
    if hidden > 128:
        return _round_up(hidden, 128), 1
    h_pack = 16
    while h_pack < hidden:
        h_pack *= 2
    return h_pack, 128 // h_pack


def _default_compute_dtype():
    """bf16 elementwise/tanh on chips with a bf16 VPU/EUP (v6e/v7x); f32 else."""
    try:
        kind = jax.devices()[0].device_kind.lower()
    except Exception:
        return jnp.float32
    if ("v6" in kind) or ("v7" in kind) or ("7x" in kind):
        return jnp.bfloat16
    return jnp.float32  # v5e and older: no bf16 VPU/EUP datapath


def _choose_tiles(S, B, K, G, H_pack, keys_isz, comp_isz, block_s):
    """Pick the S-tile size (positions per grid step) and the number of steps."""
    s128 = _round_up(max(S, 1), 128)
    if block_s is None:
        block_s = 2048            # big tiles amortize ~0.35us per-step overhead
    ts = max(128, min(_round_up(block_s, 128), s128))

    def tile_bytes(t):
        r = t // G
        return (2 * B * r * G * K * keys_isz          # double-buffered keys tile
                + 2 * B * r * G * 4                   # double-buffered output tile
                + B * r * G * H_pack * (4 + comp_isz)  # pre (f32) + h (compute dtype)
                + B * r * G * 4)                      # layer-2 result

    budget = 12 * 1024 * 1024     # fits under every generation's scoped VMEM default
    while ts > 128 and tile_bytes(ts) > budget:
        ts -= 128
    num_steps = _cdiv(s128, ts)
    ts = _round_up(_cdiv(s128, num_steps), 128)       # rebalance: minimize padding
    # v7x megacore: keep >= 2 grid steps when S allows so both TCs get work.
    if num_steps == 1 and s128 >= 256:
        ts = _round_up(_cdiv(s128, 2), 128)
        num_steps = _cdiv(s128, ts)
    return ts, num_steps


def _make_kernel(G, H_pack, compute_dtype):
    GH = G * H_pack

    def kernel(k_ref, qb_ref, w1_ref, w2_ref, b2_ref, o_ref):
        B, R, GK = k_ref.shape
        # Layer 1: packed key projection on the MXU, f32 accumulate.
        k2d = k_ref[...].reshape(B * R, GK)      # leading-dim merge: layout-preserving
        pre = jnp.dot(k2d, w1_ref[...], preferred_element_type=jnp.float32)
        # Add the hoisted, G-times-tiled query projection (b1 already folded in).
        pre = pre.reshape(B, R, GH) + qb_ref[...][:, None, :]
        h = jnp.tanh(pre.astype(compute_dtype))  # fully dense 128-lane vregs
        # Layer 2 (H -> 1 per packed position): block-diagonal contraction on the
        # otherwise-idle MXU, f32 accumulate.  Lane g = score of position g in group.
        s = jnp.dot(h.reshape(B * R, GH), w2_ref[...],
                    preferred_element_type=jnp.float32).reshape(B, R, G)
        o_ref[...] = jnp.tanh(s + b2_ref[0])     # b2 read from SMEM scalar

    return kernel


def mlp_scorer(query, keys, w1q, w1k, b1, w2, b2, *, block_s=None,
               param_dtype=jnp.bfloat16, compute_dtype=None):
    """query: (B, Q); keys: (B, S, K) -> scores (B, S) float32.

    param_dtype:   storage dtype for the S-scaling keys stream (and W1k).
                   bf16 default halves HBM traffic; matmuls accumulate in f32.
    compute_dtype: dtype of the big elementwise/tanh intermediate.  None = auto
                   (bf16 on v6e/v7x, f32 on v5e / unknown)."""
    B, S, K = keys.shape
    H = w1q.shape[-1]
    assert w1k.shape == (K, H)
    if compute_dtype is None:
        compute_dtype = _default_compute_dtype()

    H_pack, G = _pick_packing(H)
    GK, GH = G * K, G * H_pack
    keys_isz = jnp.dtype(param_dtype).itemsize
    comp_isz = jnp.dtype(compute_dtype).itemsize

    ts, num_steps = _choose_tiles(S, B, K, G, H_pack, keys_isz, comp_isz, block_s)
    s_pad = ts * num_steps
    R = ts // G

    # ---- wrapper-side prep (all padding is numerically exact) -----------------
    # Hoisted grid-invariant query projection with b1 folded in (tiny, HIGHEST prec).
    qb = jnp.dot(query.astype(jnp.float32), w1q.astype(jnp.float32),
                 precision=jax.lax.Precision.HIGHEST) + b1.reshape(1, H).astype(jnp.float32)
    qb_tiled = jnp.tile(jnp.pad(qb, ((0, 0), (0, H_pack - H))), (1, G))       # (B, GH)

    eye = jnp.eye(G, dtype=jnp.float32)
    w1k_pad = jnp.pad(w1k.astype(jnp.float32), ((0, 0), (0, H_pack - H)))     # (K, H_pack)
    w1_packed = (eye[:, None, :, None] * w1k_pad[None, :, None, :]).reshape(GK, GH)
    w2_pad = jnp.pad(w2.reshape(-1).astype(jnp.float32), (0, H_pack - H))     # (H_pack,)
    w2_packed = (eye[:, None, :] * w2_pad[None, :, None]).reshape(GH, G)
    b2_s = jnp.asarray(b2, jnp.float32).reshape(-1)[:1]                       # (1,) scalar

    keys_p = keys
    if s_pad != S:
        keys_p = jnp.pad(keys, ((0, 0), (0, s_pad - S), (0, 0)))
    # Group G consecutive positions per 128-lane row (pure row-major reshape: free).
    keys_packed = keys_p.reshape(B, s_pad // G, GK).astype(param_dtype)
    w1_in = w1_packed.astype(param_dtype)
    w2_in = w2_packed.astype(compute_dtype)

    resident = lambda i: (0, 0)
    flops = 2 * B * s_pad * K * H_pack + 2 * B * s_pad * H_pack
    bytes_accessed = (B * (s_pad // G) * GK * keys_isz + B * GH * 4
                      + GK * GH * keys_isz + GH * G * comp_isz + 4 + B * s_pad * 4)

    out = pl.pallas_call(
        _make_kernel(G, H_pack, compute_dtype),
        out_shape=jax.ShapeDtypeStruct((B, s_pad // G, G), jnp.float32),
        grid=(num_steps,),
        in_specs=[
            pl.BlockSpec((B, R, GK), lambda i: (0, i, 0)),        # keys (pipelined over S)
            pl.BlockSpec((B, GH), resident),                      # qb = query@W1q + b1
            pl.BlockSpec((GK, GH), resident),                     # block-diagonal W1k
            pl.BlockSpec((GH, G), resident),                      # block-diagonal W2
            pl.BlockSpec(memory_space=pltpu.MemorySpace.SMEM),    # b2 scalar
        ],
        out_specs=pl.BlockSpec((B, R, G), lambda i: (0, i, 0)),
        compiler_params=pltpu.CompilerParams(
            dimension_semantics=("parallel",)),
        cost_estimate=pl.CostEstimate(
            flops=int(flops),
            transcendentals=int(B * s_pad * (H_pack + 1)),
            bytes_accessed=int(bytes_accessed)),
    )(keys_packed, qb_tiled, w1_in, w2_in, b2_s)

    return out.reshape(B, s_pad)[:, :S]


def init_params(key, query_size, key_size, layers=2):
    """Deterministic parameter init matching MLPScorer(query_size, key_size, layers=2)."""
    assert layers == 2  # TODO(synk): generalize to arbitrary `layers`; module default is 2.
    size = query_size + key_size
    hidden = size // 2
    k1, k2, k3, k4 = jax.random.split(key, 4)
    # Stored as (in, out): kernel does x @ W + b  (== torch x @ W.T + b with W (out,in)).
    w1 = jax.random.normal(k1, (size, hidden), jnp.float32) * 0.1
    b1 = jax.random.normal(k2, (1, hidden), jnp.float32) * 0.1
    w2 = jax.random.normal(k3, (hidden, 1), jnp.float32) * 0.1
    b2 = jax.random.normal(k4, (1, 1), jnp.float32) * 0.1
    w1q, w1k = w1[:query_size], w1[query_size:]
    return w1q, w1k, b1, w2, b2


def mlp_scorer_reference(query, keys, w1q, w1k, b1, w2, b2):
    """Pure-JAX reference mirroring the PyTorch forward exactly."""
    B, S, K = keys.shape
    q_exp = jnp.broadcast_to(query[:, None, :], (B, S, query.shape[-1]))
    x = jnp.concatenate([q_exp, keys], axis=-1).reshape(B * S, -1)
    w1 = jnp.concatenate([w1q, w1k], axis=0)
    x = jnp.tanh(x @ w1 + b1)
    x = jnp.tanh(x @ w2 + b2)
    return x.reshape(B, S)


if __name__ == "__main__":
    B, S, Q, K = 2, 8, 16, 16          # query_size == key_size (expand_as requires it)

    key = jax.random.PRNGKey(0)
    kq, kk, kp = jax.random.split(key, 3)
    query = jax.random.normal(kq, (B, Q), jnp.float32)
    keys = jax.random.normal(kk, (B, S, K), jnp.float32)
    params = init_params(kp, Q, K, layers=2)
    ref = mlp_scorer_reference(query, keys, *params)

    # Exact path (f32 storage + f32 elementwise): tight tolerance.  H=16 -> G=8 packing.
    s_f32 = mlp_scorer(query, keys, *params,
                       param_dtype=jnp.float32, compute_dtype=jnp.float32)
    jax.block_until_ready(s_f32)
    assert s_f32.shape == (B, S)
    assert jnp.allclose(s_f32, ref, atol=1e-5, rtol=1e-5), "f32 mismatch vs reference"

    # Default path: bf16 keys/W1 storage + chip-dependent bf16/f32 elementwise.
    s_def = mlp_scorer(query, keys, *params)
    jax.block_until_ready(s_def)
    assert jnp.allclose(s_def, ref, atol=3e-2, rtol=3e-2), "default-path mismatch vs reference"

    # Multi-tile grid: several pipelined S tiles, sequence padding sliced off.
    S2 = 300
    kq2, kk2 = jax.random.split(jax.random.PRNGKey(1))
    query2 = jax.random.normal(kq2, (B, Q), jnp.float32)
    keys2 = jax.random.normal(kk2, (B, S2, K), jnp.float32)
    s2 = mlp_scorer(query2, keys2, *params, block_s=128,
                    param_dtype=jnp.float32, compute_dtype=jnp.float32)
    jax.block_until_ready(s2)
    ref2 = mlp_scorer_reference(query2, keys2, *params)
    assert s2.shape == (B, S2)
    assert jnp.allclose(s2, ref2, atol=1e-5, rtol=1e-5), "multi-tile mismatch vs reference"

    # Larger hidden size: H=48 -> H_pack=64, G=2 (exercises hidden padding + G=2 packing).
    Q3 = K3 = 48
    kq3, kk3, kp3 = jax.random.split(jax.random.PRNGKey(2), 3)
    query3 = jax.random.normal(kq3, (B, Q3), jnp.float32)
    keys3 = jax.random.normal(kk3, (B, 40, K3), jnp.float32)
    params3 = init_params(kp3, Q3, K3, layers=2)
    s3 = mlp_scorer(query3, keys3, *params3,
                    param_dtype=jnp.float32, compute_dtype=jnp.float32)
    jax.block_until_ready(s3)
    ref3 = mlp_scorer_reference(query3, keys3, *params3)
    assert jnp.allclose(s3, ref3, atol=1e-5, rtol=1e-5), "G=2 packing mismatch vs reference"

    print("KERNEL_OK")
</pallas_src>

<mosaic_0001>
module attributes {stable_mosaic.version = 11 : i64} {
  func.func @kernel(%arg0: i32, %arg1: memref<2x16x128xf32, #tpu.memory_space<vmem>>, %arg2: memref<2x128xf32, #tpu.memory_space<vmem>>, %arg3: memref<128x128xf32, #tpu.memory_space<vmem>>, %arg4: memref<128x8xf32, #tpu.memory_space<vmem>>, %arg5: memref<1xf32, #tpu.memory_space<smem>>, %arg6: memref<2x16x8xf32, #tpu.memory_space<vmem>>) attributes {dimension_semantics = [#tpu.dimension_semantics<parallel>], iteration_bounds = array<i64: 1>, scalar_prefetch = 0 : i64, scratch_operands = 0 : i64, tpu.core_type = #tpu.core_type<tc>, window_params = [{transform_indices = @transform_0, window_bounds = array<i64: 2, 16, 128>}, {pipeline_mode = #tpu.pipeline_mode<synchronous>, transform_indices = @transform_1, window_bounds = array<i64: 2, 128>}, {pipeline_mode = #tpu.pipeline_mode<synchronous>, transform_indices = @transform_2, window_bounds = array<i64: 128, 128>}, {pipeline_mode = #tpu.pipeline_mode<synchronous>, transform_indices = @transform_3, window_bounds = array<i64: 128, 8>}, {transform_indices = @transform_4, window_bounds = array<i64: 1>}, {transform_indices = @transform_5, window_bounds = array<i64: 2, 16, 8>}]} {
    %c0 = arith.constant 0 : index
    %c0_0 = arith.constant 0 : index
    %c0_1 = arith.constant 0 : index
    %0 = vector.load %arg1[%c0, %c0_0, %c0_1] : memref<2x16x128xf32, #tpu.memory_space<vmem>>, vector<2x16x128xf32>
    %1 = vector.shape_cast %0 : vector<2x16x128xf32> to vector<32x128xf32>
    %c0_2 = arith.constant 0 : index
    %c0_3 = arith.constant 0 : index
    %2 = vector.load %arg3[%c0_2, %c0_3] : memref<128x128xf32, #tpu.memory_space<vmem>>, vector<128x128xf32>
    %cst = arith.constant dense<0.000000e+00> : vector<32x128xf32>
    %3 = tpu.matmul %1, %2, %cst {dimension_numbers = #tpu.dot_dimension_numbers<[1], [0], [0], [1], [0, 0, 1, 1], [], []>} : vector<32x128xf32>, vector<128x128xf32>, vector<32x128xf32> -> vector<32x128xf32>
    %4 = vector.shape_cast %3 : vector<32x128xf32> to vector<2x16x128xf32>
    %c0_4 = arith.constant 0 : index
    %c0_5 = arith.constant 0 : index
    %5 = vector.load %arg2[%c0_4, %c0_5] : memref<2x128xf32, #tpu.memory_space<vmem>>, vector<2x128xf32>
    %6 = vector.shape_cast %5 : vector<2x128xf32> to vector<2x1x128xf32>
    %7 = vector.broadcast %6 : vector<2x1x128xf32> to vector<2x16x128xf32>
    %8 = arith.addf %4, %7 : vector<2x16x128xf32>
    %9 = math.tanh %8 : vector<2x16x128xf32>
    %10 = vector.shape_cast %9 : vector<2x16x128xf32> to vector<32x128xf32>
    %c0_6 = arith.constant 0 : index
    %c0_7 = arith.constant 0 : index
    %11 = vector.load %arg4[%c0_6, %c0_7] : memref<128x8xf32, #tpu.memory_space<vmem>>, vector<128x8xf32>
    %cst_8 = arith.constant dense<0.000000e+00> : vector<32x8xf32>
    %12 = tpu.matmul %10, %11, %cst_8 {dimension_numbers = #tpu.dot_dimension_numbers<[1], [0], [0], [1], [0, 0, 1, 1], [], []>} : vector<32x128xf32>, vector<128x8xf32>, vector<32x8xf32> -> vector<32x8xf32>
    %13 = vector.shape_cast %12 : vector<32x8xf32> to vector<2x16x8xf32>
    %c0_9 = arith.constant 0 : index
    %14 = memref.load %arg5[%c0_9] : memref<1xf32, #tpu.memory_space<smem>>
    %15 = vector.broadcast %14 : f32 to vector<2x16x8xf32>
    %16 = arith.addf %13, %15 : vector<2x16x8xf32>
    %17 = math.tanh %16 : vector<2x16x8xf32>
    %c0_10 = arith.constant 0 : index
    %c0_11 = arith.constant 0 : index
    %c0_12 = arith.constant 0 : index
    %18 = vector.load %arg6[%c0_10, %c0_11, %c0_12] : memref<2x16x8xf32, #tpu.memory_space<vmem>>, vector<2x16x8xf32>
    tpu.vector_store %arg6[%c0_10, %c0_11, %c0_12], %17 {strides = array<i32>} : memref<2x16x8xf32, #tpu.memory_space<vmem>>, vector<2x16x8xf32>,
    return
  }
  func.func @transform_0(%arg0: i32) -> (i32, i32, i32) {
    %c0_i32 = arith.constant 0 : i32
    %c0_i32_0 = arith.constant 0 : i32
    %c0_i32_1 = arith.constant 0 : i32
    return %c0_i32, %arg0, %c0_i32_0 : i32, i32, i32
  }
  func.func @transform_1(%arg0: i32) -> (i32, i32) {
    %c0_i32 = arith.constant 0 : i32
    %c0_i32_0 = arith.constant 0 : i32
    %c0_i32_1 = arith.constant 0 : i32
    return %c0_i32, %c0_i32_0 : i32, i32
  }
  func.func @transform_2(%arg0: i32) -> (i32, i32) {
    %c0_i32 = arith.constant 0 : i32
    %c0_i32_0 = arith.constant 0 : i32
    %c0_i32_1 = arith.constant 0 : i32
    return %c0_i32, %c0_i32_0 : i32, i32
  }
  func.func @transform_3(%arg0: i32) -> (i32, i32) {
    %c0_i32 = arith.constant 0 : i32
    %c0_i32_0 = arith.constant 0 : i32
    %c0_i32_1 = arith.constant 0 : i32
    return %c0_i32, %c0_i32_0 : i32, i32
  }
  func.func @transform_4(%arg0: i32) -> i32 {
    %c0_i32 = arith.constant 0 : i32
    %c0_i32_0 = arith.constant 0 : i32
    return %c0_i32 : i32
  }
  func.func @transform_5(%arg0: i32) -> (i32, i32, i32) {
    %c0_i32 = arith.constant 0 : i32
    %c0_i32_0 = arith.constant 0 : i32
    %c0_i32_1 = arith.constant 0 : i32
    return %c0_i32, %arg0, %c0_i32_0 : i32, i32, i32
  }
}

</mosaic_0001>

<bundles_post_ra>
// kernel: tpu_custom_call.1
= control target key start
LH: loop header
LB: loop body
LE: loop exit
PB: predicated region body
PF: predicated region fallthrough
CT: control target
= control target key end

     0   :  { %11 = vsyncpa [#allocation4], 0  ;;  %s462_s18 = smov [#allocation3]   ;;  %s613_s0 = inlined_call_operand.hbm [shape: f32[2,16,128], index: 0, kind: input, shape index: {}]   ;;  %s614_s1 = inlined_call_operand.vmem [shape: f32[2,128], index: 1, kind: input, shape index: {}]   ;;  %s615_s2 = inlined_call_operand.vmem [shape: f32[128,128], index: 2, kind: input, shape index: {}]   ;;  %s616_s3 = inlined_call_operand.vmem [shape: f32[128,8], index: 3, kind: input, shape index: {}]   ;;  %s617_s4 = inlined_call_operand.<no memory space> [shape: f32[1], index: 4, kind: input, shape index: {}]   ;;  %s618_s5 = inlined_call_operand.vmem [shape: f32[2,16,8], index: 5, kind: output, shape index: {}]  }
   0x1   :  { %s17_s19 = sshll.u32 %s462_s18, 4  ;;  %s18_s19 = int_to_ptr.vmem [resolvable:$true] %s17_s19 }
   0x2   :  { %s448_s20 = scalar_lea.vmem %s18_s19, 512  ;;  %p453_p1 = scmp.lt.s32.totalorder %s18_s19, %s18_s19 }
   0x3   :  { %p449_p0 = scmp.ne.s32.totalorder %s18_s19, %s448_s20  ;;  %p454_p2 = scmp.lt.s32.totalorder %s448_s20, %s448_s20 }
   0x5   :  { %p455_p3 = por %p454_p2, %p453_p1 }
   0x7   :  { %p456_p4 = pnand %p455_p3, %p449_p0 }
   0x9   :  { %459 = shalt.err (!%p456_p4)
}
   0xa   :  { %s463_s21 = smov 128   ;;  %s464_s22 = smov 8  }
   0xb   :  { %23 = dma.hbm_to_vmem [thread:$0]  %s613_s0, 512, %s18_s19, [#allocation4], %s463_s21, %s463_s21, %s464_s22  }
   0xc   :  { %460 = dma.done.wait [#allocation4], 512  }
   0xd   :  { %461 = vsyncadd [#allocation4], 4294966784  ;;  %v54_v0 = vld [vmem:[%s615_s2 + $0x78] sm:$0xff]  ;;  %v53_v1 = vld [vmem:[%s615_s2 + $0x70] sm:$0xff]  ;;  %v465_v36 = vmov 1966171168   ;;  %v153_v38 = vlaneseq  ;;  %v284_v61 = vstv %s617_s4 }
   0xe   :  { %344 = vmatprep.subr.mxu0 %v54_v0  ;;  %v52_v2 = vld [vmem:[%s615_s2 + $0x68] sm:$0xff]  ;;  %v51_v3 = vld [vmem:[%s615_s2 + $0x60] sm:$0xff]  ;;  %v50_v5 = vld [vmem:[%s615_s2 + $0x58] sm:$0xff]  ;;  %v151_v37 = vunpack.c.l.s4 %v465_v36  ;;  %vm293_vm0 = vcmask 64512  }
   0xf   :  { %345 = vmatpush3.msra.mxu0 %v54_v0  ;;  %v35_v4 = vld [vmem:[#allocation3] sm:$0xff]  ;;  %v197_v6 = vld [vmem:[%s616_s3 + $0x78] sm:$0xff]  ;;  %v196_v7 = vld [vmem:[%s616_s3 + $0x70] sm:$0xff]  ;;  %v154_v40 = vshrl.u32 %v153_v38, 7 }
  0x10   :  { %346 = vmatprep.subr.mxu0 %v53_v1  ;;  %376 = vmatprep.mubr.f32.mxu0 %v35_v4  ;;  %v49_v8 = vld [vmem:[%s615_s2 + $0x50] sm:$0xff]  ;;  %v195_v9 = vld [vmem:[%s616_s3 + $0x68] sm:$0xff]  ;;  %v194_v11 = vld [vmem:[%s616_s3 + $0x60] sm:$0xff]  ;;  %v152_v39 = vunpack.c.0.s8 %v151_v37 }
  0x11   :  { %347 = vmatpush3.msra.mxu0 %v53_v1  ;;  %382 = vmatprep.subr.mxu1 %v197_v6  ;;  %v48_v10 = vld [vmem:[%s615_s2 + $0x48] sm:$0xff]  ;;  %v47_v12 = vld [vmem:[%s615_s2 + $0x40] sm:$0xff]  ;;  %v193_v13 = vld [vmem:[%s616_s3 + $0x58] sm:$0xff]  ;;  %v166_v44 = vsub.s32 0, %v154_v40 }
  0x12   :  { %348 = vmatprep.subr.mxu0 %v52_v2  ;;  %383 = vmatpush3.msra.mxu1 %v197_v6  ;;  %v46_v14 = vld [vmem:[%s615_s2 + $0x38] sm:$0xff]  ;;  %v192_v15 = vld [vmem:[%s616_s3 + $0x50] sm:$0xff]  ;;  %v44_v17 = vld [vmem:[%s615_s2 + $0x28] sm:$0xff]  ;;  %v155_v41 = vsub.s32 %v152_v39, %v154_v40 }
  0x13   :  { %349 = vmatpush3.msra.mxu0 %v52_v2  ;;  %384 = vmatprep.subr.mxu1 %v196_v7  ;;  %v45_v16 = vld [vmem:[%s615_s2 + $0x30] sm:$0xff]  ;;  %v43_v18 = vld [vmem:[%s615_s2 + $0x20] sm:$0xff]  ;;  %v42_v19 = vld [vmem:[%s615_s2 + $0x18] sm:$0xff] }
  0x14   :  { %350 = vmatprep.subr.mxu0 %v51_v3  ;;  %385 = vmatpush3.msra.mxu1 %v196_v7  ;;  %v41_v20 = vld [vmem:[%s615_s2 + $0x10] sm:$0xff]  ;;  %v40_v21 = vld [vmem:[%s615_s2 + $0x8] sm:$0xff]  ;;  %v39_v22 = vld [vmem:[%s615_s2] sm:$0xff] }
  0x15   :  { %351 = vmatpush3.msra.mxu0 %v51_v3  ;;  %386 = vmatprep.subr.mxu1 %v195_v9  ;;  %v36_v23 = vld [vmem:[#allocation3 + $0x8] sm:$0xff]  ;;  %v37_v24 = vld [vmem:[#allocation3 + $0x10] sm:$0xff]  ;;  %v38_v25 = vld [vmem:[#allocation3 + $0x18] sm:$0xff] }
  0x16   :  { %352 = vmatprep.subr.mxu0 %v50_v5  ;;  %387 = vmatpush3.msra.mxu1 %v195_v9  ;;  %v191_v26 = vld [vmem:[%s616_s3 + $0x48] sm:$0xff]  ;;  %v190_v27 = vld [vmem:[%s616_s3 + $0x40] sm:$0xff]  ;;  %v189_v28 = vld [vmem:[%s616_s3 + $0x38] sm:$0xff] }
  0x17   :  { %353 = vmatpush3.msra.mxu0 %v50_v5  ;;  %388 = vmatprep.subr.mxu1 %v194_v11  ;;  %v188_v29 = vld [vmem:[%s616_s3 + $0x30] sm:$0xff]  ;;  %v187_v30 = vld [vmem:[%s616_s3 + $0x28] sm:$0xff]  ;;  %v186_v31 = vld [vmem:[%s616_s3 + $0x20] sm:$0xff] }
  0x18   :  { %354 = vmatprep.subr.mxu0 %v49_v8  ;;  %389 = vmatpush3.msra.mxu1 %v194_v11  ;;  %v185_v32 = vld [vmem:[%s616_s3 + $0x18] sm:$0xff]  ;;  %v184_v33 = vld [vmem:[%s616_s3 + $0x10] sm:$0xff]  ;;  %v183_v34 = vld [vmem:[%s616_s3 + $0x8] sm:$0xff] }
  0x19   :  { %355 = vmatpush3.msra.mxu0 %v49_v8  ;;  %390 = vmatprep.subr.mxu1 %v193_v13  ;;  %v182_v35 = vld [vmem:[%s616_s3] sm:$0xff] }
  0x1a   :  { %356 = vmatprep.subr.mxu0 %v48_v10  ;;  %391 = vmatpush3.msra.mxu1 %v193_v13  ;;  %v303_v42 = vld.sshfl [vmem:[%s614_s1] sm:$0x11 pattern:$0x75316420] }
  0x1b   :  { %357 = vmatpush3.msra.mxu0 %v48_v10  ;;  %392 = vmatprep.subr.mxu1 %v192_v15  ;;  %v156_v43 = vrot.slane %v303_v42, %v155_v41  ;;  %v149_v45 = vcombine.high %v303_v42, %v303_v42 }
  0x1c   :  { %358 = vmatprep.subr.mxu0 %v47_v12  ;;  %393 = vmatpush3.msra.mxu1 %v192_v15 }
  0x1d   :  { %359 = vmatpush3.msra.mxu0 %v47_v12  ;;  %394 = vmatprep.subr.mxu1 %v191_v26  ;;  %v167_v46 = vrot.slane %v156_v43, %v166_v44  ;;  %v163_v47 = vrot.slane %v149_v45, %v155_v41 }
  0x1e   :  { %360 = vmatprep.subr.mxu0 %v46_v14  ;;  %395 = vmatpush3.msra.mxu1 %v191_v26 }
  0x1f   :  { %361 = vmatpush3.msra.mxu0 %v46_v14  ;;  %396 = vmatprep.subr.mxu1 %v190_v27  ;;  %v171_v51 = vrot.slane %v163_v47, %v166_v44 }
  0x20   :  { %362 = vmatprep.subr.mxu0 %v45_v16  ;;  %397 = vmatpush3.msra.mxu1 %v190_v27 }
  0x21   :  { %363 = vmatpush3.msra.mxu0 %v45_v16  ;;  %398 = vmatprep.subr.mxu1 %v189_v28 }
  0x22   :  { %364 = vmatprep.subr.mxu0 %v44_v17  ;;  %399 = vmatpush3.msra.mxu1 %v189_v28 }
  0x23   :  { %365 = vmatpush3.msra.mxu0 %v44_v17  ;;  %400 = vmatprep.subr.mxu1 %v188_v29 }
  0x24   :  { %366 = vmatprep.subr.mxu0 %v43_v18  ;;  %401 = vmatpush3.msra.mxu1 %v188_v29 }
  0x25   :  { %367 = vmatpush3.msra.mxu0 %v43_v18  ;;  %402 = vmatprep.subr.mxu1 %v187_v30 }
  0x26   :  { %368 = vmatprep.subr.mxu0 %v42_v19  ;;  %403 = vmatpush3.msra.mxu1 %v187_v30 }
  0x27   :  { %369 = vmatpush3.msra.mxu0 %v42_v19  ;;  %404 = vmatprep.subr.mxu1 %v186_v31 }
  0x28   :  { %370 = vmatprep.subr.mxu0 %v41_v20  ;;  %405 = vmatpush3.msra.mxu1 %v186_v31 }
  0x29   :  { %371 = vmatpush3.msra.mxu0 %v41_v20  ;;  %406 = vmatprep.subr.mxu1 %v185_v32 }
  0x2a   :  { %372 = vmatprep.subr.mxu0 %v40_v21  ;;  %407 = vmatpush3.msra.mxu1 %v185_v32 }
  0x2b   :  { %373 = vmatpush3.msra.mxu0 %v40_v21  ;;  %408 = vmatprep.subr.mxu1 %v184_v33 }
  0x2c   :  { %374 = vmatprep.subr.mxu0 %v39_v22  ;;  %409 = vmatpush3.msra.mxu1 %v184_v33 }
  0x2d   :  { %375 = vmatpush3.msra.mxu0 %v39_v22  ;;  %410 = vmatprep.subr.mxu1 %v183_v34 }
  0x2e   :  { %377 = vmatmul.mubr.f32.vlgmr.msra.gmra.mxu0 %v36_v23  ;;  %411 = vmatpush3.msra.mxu1 %v183_v34 }
  0x2f   :  { %379 = vmatprep.mubr.f32.mxu0 %v37_v24  ;;  %412 = vmatprep.subr.mxu1 %v182_v35 }
  0x30   :  { %413 = vmatpush3.msra.mxu1 %v182_v35 }
  0x32   :  { %380 = vmatmul.mubr.f32.gmra.mxu0 %v38_v25 }
  0xee   :  { %v378_v48 = vpop.f32.mrf.mxu0 }
  0xef   :  { %v175_v49 = vadd.f32 %v378_v48, %v167_v46 }
  0xf0   :  { %v121_v50 = vpop.f32.mrf.mxu0 }
  0xf1   :  { %v174_v52 = vadd.f32 %v167_v46, %v121_v50 }
  0xf2   :  { %v381_v53 = vpop.f32.mrf.mxu0 }
  0xf3   :  { %424 = vtanh.f32 %v174_v52  ;;  %v177_v54 = vadd.f32 %v381_v53, %v171_v51 }
  0xf4   :  { %426 = vtanh.f32 %v175_v49  ;;  %v131_v55 = vpop.f32.mrf.mxu0 }
  0xf5   :  { %v176_v56 = vadd.f32 %v171_v51, %v131_v55 }
  0xf7   :  { %428 = vtanh.f32 %v176_v56 }
  0xf8   :  { %430 = vtanh.f32 %v177_v54 }
 0x100   :  { %v425_v57 = vpop.eup %424 }
 0x101   :  { %v427_v58 = vpop.eup %426  ;;  %414 = vmatprep.mubr.f32.mxu1 %v425_v57 }
 0x102   :  { %415 = vmatmul.mubr.f32.vlgmr.msra.gmra.mxu1 %v427_v58 }
 0x104   :  { %v429_v59 = vpop.eup %428 }
 0x105   :  { %v431_v60 = vpop.eup %430  ;;  %417 = vmatprep.mubr.f32.mxu1 %v429_v59 }
 0x106   :  { %418 = vmatmul.mubr.f32.gmra.mxu1 %v431_v60 }
 0x1c2   :  { %v416_v62 = vpop.f32.mrf.mxu1 }
 0x1c3   :  { %v286_v63 = vadd.f32 %v416_v62, %v284_v61 }
 0x1c4   :  { %v264_v0 = vpop.f32.mrf.mxu1 }
 0x1c5   :  { %432 = vtanh.f32 %v286_v63  ;;  %v285_v1 = vadd.f32 %v284_v61, %v264_v0 }
 0x1c6   :  { %v419_v2 = vpop.f32.mrf.mxu1 }
 0x1c7   :  { %434 = vtanh.f32 %v285_v1  ;;  %v288_v3 = vadd.f32 %v419_v2, %v284_v61 }
 0x1c8   :  { %v274_v4 = vpop.f32.mrf.mxu1 }
 0x1c9   :  { %436 = vtanh.f32 %v288_v3  ;;  %v287_v5 = vadd.f32 %v284_v61, %v274_v4 }
 0x1cb   :  { %438 = vtanh.f32 %v287_v5 }
 0x1d2   :  { %v433_v6 = vpop.eup %432 }
 0x1d3   :  { %295 = vst.msk [vmem:[%s618_s5 + $0x8] sm:$0xff] %vm293_vm0, %v433_v6 }
 0x1d4   :  { %v435_v7 = vpop.eup %434 }
 0x1d5   :  { %294 = vst.msk [vmem:[%s618_s5] sm:$0xff] %vm293_vm0, %v435_v7 }
 0x1d6   :  { %v437_v8 = vpop.eup %436 }
 0x1d7   :  { %297 = vst.msk [vmem:[%s618_s5 + $0x18] sm:$0xff] %vm293_vm0, %v437_v8 }
 0x1d8   :  { %v439_v9 = vpop.eup %438 }
 0x1d9   :  { %296 = vst.msk [vmem:[%s618_s5 + $0x10] sm:$0xff] %vm293_vm0, %v439_v9 }
 0x1da   :  { %302 = vsyncpa [#allocation4], 1 }

</bundles_post_ra>
